<compile_context>
chip_gen: v7x
topology: tpu7x:2x2x1
jax: 0.10.0
libtpu: 0.0.40
codegen_flags: <defaults>
</compile_context>

<pallas_src>
import functools

import jax
import jax.numpy as jnp
from jax import lax
from jax.experimental import pallas as pl
from jax.experimental.pallas import tpu as pltpu


KERNEL_SIZE = 3
LAYERS = 2
REC_FIELD = KERNEL_SIZE ** LAYERS          # 9
PAD = (REC_FIELD - 1) // 2                 # 4
_LANES = 128


def _round_up(x, m):
    return (x + m - 1) // m * m


# ----------------------------- kernel ----------------------------------------


def _make_kernel(rows_per_batch):
    """Kernel for one (batch, time-tile) grid step.

    x_hbm : (B * (T_pad + 8), C)  pre-padded input, flat, left in HBM (pl.ANY)
    w_ref : (9, C, Np)            fused per-tap weights, resident in VMEM
    b_ref : (1, Np)               fused bias (f32)
    o_ref : (tile_T, Np)          output block (f32, lane-dense)
    x_buf : (tile_T + 8, C)       VMEM scratch for the haloed input window
    in_sem: DMA semaphore for the input copy
    """
    def kernel(x_hbm, w_ref, b_ref, o_ref, x_buf, in_sem):
        b = pl.program_id(0)
        t = pl.program_id(1)
        tile_rows = o_ref.shape[0]
        win_rows = x_buf.shape[0]

        # Manual halo copy: rows [b*(T_pad+8) + t*tile, ... + tile + 8).
        start = b * rows_per_batch + t * tile_rows
        cp = pltpu.make_async_copy(
            x_hbm.at[pl.ds(start, win_rows), :], x_buf, in_sem)
        cp.start()
        cp.wait()

        # Fused kernel-9 conv as 9 per-tap MXU dots accumulated in f32.
        acc = jnp.dot(x_buf[0:tile_rows, :], w_ref[0],
                      preferred_element_type=jnp.float32)
        for j in range(1, REC_FIELD):
            acc = acc + jnp.dot(x_buf[j:j + tile_rows, :], w_ref[j],
                                preferred_element_type=jnp.float32)
        o_ref[...] = acc + b_ref[...]

    return kernel


# ----------------------------- weight fusion ----------------------------------


def _fuse_params(params, n_pad, compute_dtype):
    """Compose the two Conv1d layers into one kernel-9 conv.

    Returns (w_eff, b_eff):
      w_eff : (9, C, n_pad)  tap-j weight = W0[j%3] @ W1[j//3], zero-padded lanes
      b_eff : (1, n_pad)     b1 + b0 @ sum_k W1[k]               (float32)
    """
    hi = lax.Precision.HIGHEST
    w0 = params["w0"].astype(jnp.float32)                 # (3C, C, 3)  torch layout
    w1 = params["w1"].astype(jnp.float32)                 # (9C, 3C, 3)
    W0 = jnp.transpose(w0, (2, 1, 0))                      # (3, C, 3C)
    W1 = jnp.transpose(w1, (2, 1, 0))                      # (3, 3C, 9C)

    taps = [jnp.matmul(W0[j % KERNEL_SIZE], W1[j // KERNEL_SIZE], precision=hi)
            for j in range(REC_FIELD)]                     # each (C, 9C)
    w_eff = jnp.stack(taps, axis=0)                        # (9, C, 9C)
    b_eff = params["b1"].astype(jnp.float32) + jnp.matmul(
        params["b0"].astype(jnp.float32), W1.sum(axis=0), precision=hi)

    c_out = w_eff.shape[-1]
    w_eff = jnp.pad(w_eff, ((0, 0), (0, 0), (0, n_pad - c_out)))
    b_eff = jnp.pad(b_eff, (0, n_pad - c_out))
    return w_eff.astype(compute_dtype), b_eff.reshape(1, n_pad).astype(jnp.float32)


# ----------------------------- public wrapper ---------------------------------


@functools.partial(jax.jit,
                   static_argnames=("compute_dtype", "tile_t", "channels_last_out"))
def two_sided_dil_conv1d(x, params, *, compute_dtype=jnp.bfloat16, tile_t=512,
                         channels_last_out=False):
    """Pallas forward of TwoSidedDilConv1d.

    x: (B, C, T) float32.
    Returns (B, 9*C, T) (PyTorch layout) or (B, T, 9*C) if channels_last_out,
    which skips the final transpose pass for channels-last consumers.
    """
    B, C, T = x.shape
    c_out = C * REC_FIELD
    n_pad = _round_up(c_out, _LANES)            # lane-dense output channels

    # Time tiling: one (tile, n_pad) output block per grid step.
    if T <= tile_t:
        tile = T
        t_total = T
    else:
        tile = tile_t
        assert tile % 8 == 0, "tile_t must be a multiple of 8 when T > tile_t"
        t_total = _round_up(T, tile)
    n_t = t_total // tile
    win = tile + 2 * PAD                        # input rows per output tile (halo)
    rows_per_batch = t_total + 2 * PAD

    # Wrapper-side layout plumbing: channels-last, halo + tile padding, cast.
    # TODO(synk): if the producer already emits (B, T, C) the transpose+pad HBM
    # pass can be removed by zero-filling the halo rows inside the kernel.
    x_tc = jnp.transpose(x, (0, 2, 1))                                   # (B,T,C)
    x_pad = jnp.pad(x_tc, ((0, 0), (PAD, PAD + (t_total - T)), (0, 0)))
    x_pad = x_pad.astype(compute_dtype).reshape(B * rows_per_batch, C)

    w_eff, b_eff = _fuse_params(params, n_pad, compute_dtype)

    itemsize = jnp.dtype(compute_dtype).itemsize
    cost = pl.CostEstimate(
        flops=2 * B * t_total * (REC_FIELD * C) * n_pad,
        transcendentals=0,
        bytes_accessed=(x_pad.size * itemsize + w_eff.size * itemsize
                        + b_eff.size * 4 + B * t_total * n_pad * 4))

    out = pl.pallas_call(
        _make_kernel(rows_per_batch),
        grid=(B, n_t),
        in_specs=[
            pl.BlockSpec(memory_space=pl.ANY),                           # input (HBM)
            pl.BlockSpec((REC_FIELD, C, n_pad), lambda b, t: (0, 0, 0)),  # weights
            pl.BlockSpec((1, n_pad), lambda b, t: (0, 0)),               # bias
        ],
        out_specs=pl.BlockSpec((None, tile, n_pad), lambda b, t: (b, t, 0)),
        out_shape=jax.ShapeDtypeStruct((B, t_total, n_pad), jnp.float32),
        scratch_shapes=[
            pltpu.VMEM((win, C), compute_dtype),    # haloed input tile
            pltpu.SemaphoreType.DMA,                # input copy semaphore
        ],
        compiler_params=pltpu.CompilerParams(
            dimension_semantics=("parallel", "parallel"),
            vmem_limit_bytes=32 * 1024 * 1024),
        cost_estimate=cost,
    )(x_pad, w_eff, b_eff)

    out = out[:, :T, :c_out]                     # drop time-tile / lane padding
    if channels_last_out:
        return out                               # (B, T, 9C)
    return jnp.transpose(out, (0, 2, 1))         # (B, 9C, T) — PyTorch layout


# ----------------------------- reference & params -----------------------------


def reference(x, params):
    """Unfused two-conv reference that mirrors the PyTorch module exactly."""
    hi = lax.Precision.HIGHEST
    y = lax.conv_general_dilated(
        x, params["w0"], window_strides=(1,), padding=[(PAD, PAD)],
        dimension_numbers=("NCH", "OIH", "NCH"), precision=hi)
    y = y + params["b0"][None, :, None]
    y = lax.conv_general_dilated(
        y, params["w1"], window_strides=(1,), padding=[(0, 0)],
        rhs_dilation=(KERNEL_SIZE,), dimension_numbers=("NCH", "OIH", "NCH"),
        precision=hi)
    return y + params["b1"][None, :, None]


def init_params(key, in_dim):
    """Gaussian parameters with PyTorch-native Conv1d shapes."""
    c0_out = in_dim * KERNEL_SIZE
    c1_out = in_dim * KERNEL_SIZE ** 2
    k0, k1, k2, k3 = jax.random.split(key, 4)
    n = lambda k, shape: (0.1 * jax.random.normal(k, shape)).astype(jnp.float32)
    return dict(w0=n(k0, (c0_out, in_dim, KERNEL_SIZE)), b0=n(k1, (c0_out,)),
                w1=n(k2, (c1_out, c0_out, KERNEL_SIZE)), b1=n(k3, (c1_out,)))


def init_params_int(key, in_dim):
    """Integer-valued params (exactly representable in bf16) for exact checks."""
    c0_out = in_dim * KERNEL_SIZE
    c1_out = in_dim * KERNEL_SIZE ** 2
    k0, k1, k2, k3 = jax.random.split(key, 4)
    r = lambda k, shape: jax.random.randint(k, shape, -1, 2).astype(jnp.float32)
    return dict(w0=r(k0, (c0_out, in_dim, KERNEL_SIZE)), b0=r(k1, (c0_out,)),
                w1=r(k2, (c1_out, c0_out, KERNEL_SIZE)), b1=r(k3, (c1_out,)))


# ----------------------------- demo -------------------------------------------


if __name__ == "__main__":
    def run_case(name, B, C, T, *, integer, compute_dtype, tile_t, atol, rtol):
        key = jax.random.PRNGKey(0)
        kp, kx = jax.random.split(key)
        if integer:
            params = init_params_int(kp, C)
            x = jax.random.randint(kx, (B, C, T), -3, 4).astype(jnp.float32)
        else:
            params = init_params(kp, C)
            x = jax.random.normal(kx, (B, C, T), dtype=jnp.float32)

        y = jax.block_until_ready(
            two_sided_dil_conv1d(x, params, compute_dtype=compute_dtype,
                                 tile_t=tile_t))
        assert y.shape == (B, C * REC_FIELD, T), (name, y.shape)
        assert bool(jnp.all(jnp.isfinite(y))), name

        y_ref = jax.block_until_ready(reference(x, params))
        err = float(jnp.max(jnp.abs(y - y_ref)))
        assert bool(jnp.allclose(y, y_ref, atol=atol, rtol=rtol)), (
            f"{name}: max abs err {err}")

    # Exact structural checks (integer data is exact under any MXU precision and
    # under the bf16 cast): validates conv fusion, tap order, halo DMA, lane pad.
    run_case("int_exact_f32_single_tile", 2, 16, 16, integer=True,
             compute_dtype=jnp.float32, tile_t=512, atol=1e-5, rtol=0.0)
    run_case("int_exact_bf16_time_tiled", 1, 7, 20, integer=True,
             compute_dtype=jnp.bfloat16, tile_t=8, atol=1e-5, rtol=0.0)
    # Realistic Gaussian data on the default bf16 fast path; the tolerance only
    # covers the bf16 operand cast (structure already validated exactly above).
    run_case("gaussian_bf16", 2, 16, 16, integer=False,
             compute_dtype=jnp.bfloat16, tile_t=512, atol=5e-2, rtol=5e-2)

    print("KERNEL_OK")
</pallas_src>

<mosaic_0001>
module attributes {stable_mosaic.version = 11 : i64} {
  func.func @kernel(%arg0: i32, %arg1: i32, %arg2: memref<48x16xf32, #tpu.memory_space<any>>, %arg3: memref<9x16x256xf32, #tpu.memory_space<vmem>>, %arg4: memref<1x256xf32, #tpu.memory_space<vmem>>, %arg5: memref<1x16x256xf32, #tpu.memory_space<vmem>>, %arg6: memref<24x16xf32, #tpu.memory_space<vmem>>, %arg7: memref<!tpu.dma_semaphore, #tpu.memory_space<semaphore_mem>>) attributes {dimension_semantics = [#tpu.dimension_semantics<parallel>, #tpu.dimension_semantics<parallel>], iteration_bounds = array<i64: 2, 1>, scalar_prefetch = 0 : i64, scratch_operands = 2 : i64, tpu.core_type = #tpu.core_type<tc>, window_params = [{}, {pipeline_mode = #tpu.pipeline_mode<synchronous>, transform_indices = @transform_1, window_bounds = array<i64: 9, 16, 256>}, {pipeline_mode = #tpu.pipeline_mode<synchronous>, transform_indices = @transform_2, window_bounds = array<i64: 1, 256>}, {transform_indices = @transform_3, window_bounds = array<i64: 1, 16, 256>}]} {
    %c24_i32 = arith.constant 24 : i32
    %0 = arith.muli %arg0, %c24_i32 : i32
    %c16_i32 = arith.constant 16 : i32
    %1 = arith.muli %arg1, %c16_i32 : i32
    %2 = arith.addi %0, %1 : i32
    %c0_i32 = arith.constant 0 : i32
    %3 = tpu.memref_slice %arg2[%2, %c0_i32] : memref<48x16xf32, #tpu.memory_space<any>> -> memref<24x16xf32, #tpu.memory_space<any>>
    tpu.enqueue_dma source(%3 : memref<24x16xf32, #tpu.memory_space<any>>) target(%arg6 : memref<24x16xf32, #tpu.memory_space<vmem>>) target_semaphore(%arg7 : memref<!tpu.dma_semaphore, #tpu.memory_space<semaphore_mem>>)
    %c0_i32_0 = arith.constant 0 : i32
    %4 = tpu.memref_slice %arg2[%2, %c0_i32_0] : memref<48x16xf32, #tpu.memory_space<any>> -> memref<24x16xf32, #tpu.memory_space<any>>
    tpu.wait_dma2 semaphore(%arg7 : memref<!tpu.dma_semaphore, #tpu.memory_space<semaphore_mem>>) src(%4 : memref<24x16xf32, #tpu.memory_space<any>>) dst(%arg6 : memref<24x16xf32, #tpu.memory_space<vmem>>)
    %c0 = arith.constant 0 : index
    %c0_1 = arith.constant 0 : index
    %5 = vector.load %arg6[%c0, %c0_1] : memref<24x16xf32, #tpu.memory_space<vmem>>, vector<16x16xf32>
    %c0_2 = arith.constant 0 : index
    %c0_3 = arith.constant 0 : index
    %c0_4 = arith.constant 0 : index
    %6 = vector.load %arg3[%c0_2, %c0_3, %c0_4] : memref<9x16x256xf32, #tpu.memory_space<vmem>>, vector<1x16x256xf32>
    %7 = vector.shape_cast %6 : vector<1x16x256xf32> to vector<16x256xf32>
    %cst = arith.constant dense<0.000000e+00> : vector<16x256xf32>
    %8 = tpu.matmul %5, %7, %cst {dimension_numbers = #tpu.dot_dimension_numbers<[1], [0], [0], [1], [0, 0, 1, 1], [], []>} : vector<16x16xf32>, vector<16x256xf32>, vector<16x256xf32> -> vector<16x256xf32>
    %c1 = arith.constant 1 : index
    %c0_5 = arith.constant 0 : index
    %9 = vector.load %arg6[%c1, %c0_5] : memref<24x16xf32, #tpu.memory_space<vmem>>, vector<16x16xf32>
    %c1_6 = arith.constant 1 : index
    %c0_7 = arith.constant 0 : index
    %c0_8 = arith.constant 0 : index
    %10 = vector.load %arg3[%c1_6, %c0_7, %c0_8] : memref<9x16x256xf32, #tpu.memory_space<vmem>>, vector<1x16x256xf32>
    %11 = vector.shape_cast %10 : vector<1x16x256xf32> to vector<16x256xf32>
    %cst_9 = arith.constant dense<0.000000e+00> : vector<16x256xf32>
    %12 = tpu.matmul %9, %11, %cst_9 {dimension_numbers = #tpu.dot_dimension_numbers<[1], [0], [0], [1], [0, 0, 1, 1], [], []>} : vector<16x16xf32>, vector<16x256xf32>, vector<16x256xf32> -> vector<16x256xf32>
    %13 = arith.addf %8, %12 : vector<16x256xf32>
    %c2 = arith.constant 2 : index
    %c0_10 = arith.constant 0 : index
    %14 = vector.load %arg6[%c2, %c0_10] : memref<24x16xf32, #tpu.memory_space<vmem>>, vector<16x16xf32>
    %c2_11 = arith.constant 2 : index
    %c0_12 = arith.constant 0 : index
    %c0_13 = arith.constant 0 : index
    %15 = vector.load %arg3[%c2_11, %c0_12, %c0_13] : memref<9x16x256xf32, #tpu.memory_space<vmem>>, vector<1x16x256xf32>
    %16 = vector.shape_cast %15 : vector<1x16x256xf32> to vector<16x256xf32>
    %cst_14 = arith.constant dense<0.000000e+00> : vector<16x256xf32>
    %17 = tpu.matmul %14, %16, %cst_14 {dimension_numbers = #tpu.dot_dimension_numbers<[1], [0], [0], [1], [0, 0, 1, 1], [], []>} : vector<16x16xf32>, vector<16x256xf32>, vector<16x256xf32> -> vector<16x256xf32>
    %18 = arith.addf %13, %17 : vector<16x256xf32>
    %c3 = arith.constant 3 : index
    %c0_15 = arith.constant 0 : index
    %19 = vector.load %arg6[%c3, %c0_15] : memref<24x16xf32, #tpu.memory_space<vmem>>, vector<16x16xf32>
    %c3_16 = arith.constant 3 : index
    %c0_17 = arith.constant 0 : index
    %c0_18 = arith.constant 0 : index
    %20 = vector.load %arg3[%c3_16, %c0_17, %c0_18] : memref<9x16x256xf32, #tpu.memory_space<vmem>>, vector<1x16x256xf32>
    %21 = vector.shape_cast %20 : vector<1x16x256xf32> to vector<16x256xf32>
    %cst_19 = arith.constant dense<0.000000e+00> : vector<16x256xf32>
    %22 = tpu.matmul %19, %21, %cst_19 {dimension_numbers = #tpu.dot_dimension_numbers<[1], [0], [0], [1], [0, 0, 1, 1], [], []>} : vector<16x16xf32>, vector<16x256xf32>, vector<16x256xf32> -> vector<16x256xf32>
    %23 = arith.addf %18, %22 : vector<16x256xf32>
    %c4 = arith.constant 4 : index
    %c0_20 = arith.constant 0 : index
    %24 = vector.load %arg6[%c4, %c0_20] : memref<24x16xf32, #tpu.memory_space<vmem>>, vector<16x16xf32>
    %c4_21 = arith.constant 4 : index
    %c0_22 = arith.constant 0 : index
    %c0_23 = arith.constant 0 : index
    %25 = vector.load %arg3[%c4_21, %c0_22, %c0_23] : memref<9x16x256xf32, #tpu.memory_space<vmem>>, vector<1x16x256xf32>
    %26 = vector.shape_cast %25 : vector<1x16x256xf32> to vector<16x256xf32>
    %cst_24 = arith.constant dense<0.000000e+00> : vector<16x256xf32>
    %27 = tpu.matmul %24, %26, %cst_24 {dimension_numbers = #tpu.dot_dimension_numbers<[1], [0], [0], [1], [0, 0, 1, 1], [], []>} : vector<16x16xf32>, vector<16x256xf32>, vector<16x256xf32> -> vector<16x256xf32>
    %28 = arith.addf %23, %27 : vector<16x256xf32>
    %c5 = arith.constant 5 : index
    %c0_25 = arith.constant 0 : index
    %29 = vector.load %arg6[%c5, %c0_25] : memref<24x16xf32, #tpu.memory_space<vmem>>, vector<16x16xf32>
    %c5_26 = arith.constant 5 : index
    %c0_27 = arith.constant 0 : index
    %c0_28 = arith.constant 0 : index
    %30 = vector.load %arg3[%c5_26, %c0_27, %c0_28] : memref<9x16x256xf32, #tpu.memory_space<vmem>>, vector<1x16x256xf32>
    %31 = vector.shape_cast %30 : vector<1x16x256xf32> to vector<16x256xf32>
    %cst_29 = arith.constant dense<0.000000e+00> : vector<16x256xf32>
    %32 = tpu.matmul %29, %31, %cst_29 {dimension_numbers = #tpu.dot_dimension_numbers<[1], [0], [0], [1], [0, 0, 1, 1], [], []>} : vector<16x16xf32>, vector<16x256xf32>, vector<16x256xf32> -> vector<16x256xf32>
    %33 = arith.addf %28, %32 : vector<16x256xf32>
    %c6 = arith.constant 6 : index
    %c0_30 = arith.constant 0 : index
    %34 = vector.load %arg6[%c6, %c0_30] : memref<24x16xf32, #tpu.memory_space<vmem>>, vector<16x16xf32>
    %c6_31 = arith.constant 6 : index
    %c0_32 = arith.constant 0 : index
    %c0_33 = arith.constant 0 : index
    %35 = vector.load %arg3[%c6_31, %c0_32, %c0_33] : memref<9x16x256xf32, #tpu.memory_space<vmem>>, vector<1x16x256xf32>
    %36 = vector.shape_cast %35 : vector<1x16x256xf32> to vector<16x256xf32>
    %cst_34 = arith.constant dense<0.000000e+00> : vector<16x256xf32>
    %37 = tpu.matmul %34, %36, %cst_34 {dimension_numbers = #tpu.dot_dimension_numbers<[1], [0], [0], [1], [0, 0, 1, 1], [], []>} : vector<16x16xf32>, vector<16x256xf32>, vector<16x256xf32> -> vector<16x256xf32>
    %38 = arith.addf %33, %37 : vector<16x256xf32>
    %c7 = arith.constant 7 : index
    %c0_35 = arith.constant 0 : index
    %39 = vector.load %arg6[%c7, %c0_35] : memref<24x16xf32, #tpu.memory_space<vmem>>, vector<16x16xf32>
    %c7_36 = arith.constant 7 : index
    %c0_37 = arith.constant 0 : index
    %c0_38 = arith.constant 0 : index
    %40 = vector.load %arg3[%c7_36, %c0_37, %c0_38] : memref<9x16x256xf32, #tpu.memory_space<vmem>>, vector<1x16x256xf32>
    %41 = vector.shape_cast %40 : vector<1x16x256xf32> to vector<16x256xf32>
    %cst_39 = arith.constant dense<0.000000e+00> : vector<16x256xf32>
    %42 = tpu.matmul %39, %41, %cst_39 {dimension_numbers = #tpu.dot_dimension_numbers<[1], [0], [0], [1], [0, 0, 1, 1], [], []>} : vector<16x16xf32>, vector<16x256xf32>, vector<16x256xf32> -> vector<16x256xf32>
    %43 = arith.addf %38, %42 : vector<16x256xf32>
    %c8 = arith.constant 8 : index
    %c0_40 = arith.constant 0 : index
    %44 = vector.load %arg6[%c8, %c0_40] : memref<24x16xf32, #tpu.memory_space<vmem>>, vector<16x16xf32>
    %c8_41 = arith.constant 8 : index
    %c0_42 = arith.constant 0 : index
    %c0_43 = arith.constant 0 : index
    %45 = vector.load %arg3[%c8_41, %c0_42, %c0_43] : memref<9x16x256xf32, #tpu.memory_space<vmem>>, vector<1x16x256xf32>
    %46 = vector.shape_cast %45 : vector<1x16x256xf32> to vector<16x256xf32>
    %cst_44 = arith.constant dense<0.000000e+00> : vector<16x256xf32>
    %47 = tpu.matmul %44, %46, %cst_44 {dimension_numbers = #tpu.dot_dimension_numbers<[1], [0], [0], [1], [0, 0, 1, 1], [], []>} : vector<16x16xf32>, vector<16x256xf32>, vector<16x256xf32> -> vector<16x256xf32>
    %48 = arith.addf %43, %47 : vector<16x256xf32>
    %c0_45 = arith.constant 0 : index
    %c0_46 = arith.constant 0 : index
    %49 = vector.load %arg4[%c0_45, %c0_46] : memref<1x256xf32, #tpu.memory_space<vmem>>, vector<1x256xf32>
    %50 = vector.broadcast %49 : vector<1x256xf32> to vector<16x256xf32>
    %51 = arith.addf %48, %50 : vector<16x256xf32>
    %c0_47 = arith.constant 0 : index
    %c0_48 = arith.constant 0 : index
    %c0_49 = arith.constant 0 : index
    %52 = vector.load %arg5[%c0_47, %c0_48, %c0_49] : memref<1x16x256xf32, #tpu.memory_space<vmem>>, vector<1x16x256xf32>
    %53 = vector.shape_cast %52 : vector<1x16x256xf32> to vector<16x256xf32>
    %54 = vector.shape_cast %51 : vector<16x256xf32> to vector<1x16x256xf32>
    tpu.vector_store %arg5[%c0_47, %c0_48, %c0_49], %54 {strides = array<i32>} : memref<1x16x256xf32, #tpu.memory_space<vmem>>, vector<1x16x256xf32>,
    return
  }
  func.func @transform_1(%arg0: i32, %arg1: i32) -> (i32, i32, i32) {
    %c0_i32 = arith.constant 0 : i32
    %c0_i32_0 = arith.constant 0 : i32
    %c0_i32_1 = arith.constant 0 : i32
    %c0_i32_2 = arith.constant 0 : i32
    return %c0_i32, %c0_i32_0, %c0_i32_1 : i32, i32, i32
  }
  func.func @transform_2(%arg0: i32, %arg1: i32) -> (i32, i32) {
    %c0_i32 = arith.constant 0 : i32
    %c0_i32_0 = arith.constant 0 : i32
    %c0_i32_1 = arith.constant 0 : i32
    return %c0_i32, %c0_i32_0 : i32, i32
  }
  func.func @transform_3(%arg0: i32, %arg1: i32) -> (i32, i32, i32) {
    %c0_i32 = arith.constant 0 : i32
    %c0_i32_0 = arith.constant 0 : i32
    return %arg0, %arg1, %c0_i32 : i32, i32, i32
  }
}

</mosaic_0001>

<bundles_post_ra>
// kernel: two_sided_dil_conv1d.1
= control target key start
LH: loop header
LB: loop body
LE: loop exit
PB: predicated region body
PF: predicated region fallthrough
CT: control target
= control target key end

     0   :  { %s1356_s12 = smov 0   ;;  %s1358_s13 = smov 0   ;;  %s1550_s0 = inlined_call_operand.vmem [shape: f32[48,16], index: 0, kind: input, shape index: {}]   ;;  %s1551_s1 = inlined_call_operand.vmem [shape: f32[9,16,256], index: 1, kind: input, shape index: {}]   ;;  %s1552_s2 = inlined_call_operand.vmem [shape: f32[1,256], index: 2, kind: input, shape index: {}]   ;;  %s1553_s3 = inlined_call_operand.vmem [shape: f32[2,16,256], index: 3, kind: output, shape index: {}]  }
   0x1   :  { %s1360_s14 = smov 0  }
   0x2 LB: > { %s25_s15 = sadd.s32 1, %s1329_s13  ;;  %p1157_p0 = scmp.ge.s32.totalorder %s1333_s14, 1  ;;  %s1333_s14 = sphi %s1360_s14, %s13_s14   ;;  %s1329_s13 = sphi %s1358_s13, %s1555_s13   ;;  %s1325_s12 = sphi %s1356_s12, %s1554_s12  }
   0x3   : > { %p27_p1 = scmp.ge.s32.totalorder %s25_s15, 2  ;;  %p117_p2 = scmp.lt.s32.totalorder %s1333_s14, 3 }
   0x5   : > { %s1557_s15 = smov (%p27_p1, %s25_s15), 0  ;;  %p118_p3 = pnand %p1157_p0, %p117_p2 }
   0x6   : > { %p140_p4 = scmp.lt.s32.totalorder (!%p118_p3), %s1325_s12, 1  ;;  %s150_s16 = smul.u32 (!%p118_p3), 24, %s1325_s12 }
   0x7   : > { %121 = sbr.rel (%p118_p3) target bundleno = 282 (0x11a), region = 28 }
   0x8   : > { %s153_s19 = scalar_lea.vmem (!%p118_p3), %s1550_s0, %s150_s16 }
   0x9   : > { %v186_v0 = vld [vmem:[%s153_s19] sm:$0xff] (!%p118_p3)  ;;  %v188_v1 = vld [vmem:[%s153_s19 + $0x8] sm:$0xff] (!%p118_p3)  ;;  %v190_v2 = vld [vmem:[%s153_s19 + $0x10] sm:$0xff] (!%p118_p3) }
   0xa   : > { %187 = vst [vmem:[#allocation2] sm:$0xff] (!%p118_p3), %v186_v0  ;;  %189 = vst [vmem:[#allocation2 + $0x8] sm:$0xff] (!%p118_p3), %v188_v1 }
   0xb   : > { %191 = vst [vmem:[#allocation2 + $0x10] sm:$0xff] (!%p118_p3), %v190_v2 }
   0xe   : > { %s1559_s12 = smov (!%p140_p4, %s1325_s12), 1 }
   0xf   : > { %s1213_s20 = sshll.u32 %s1559_s12, 5 }
  0x10   : > { %s1380_s23 = scalar_lea.vmem %s1553_s3, %s1213_s20 }
  0x11   : > { %199 = vsyncadd [#allocation3], 384 }
  0x12   : > { %1321 = dma.done.wait [#allocation3], 384 }
  0x13   : > { %1322 = vsyncadd [#allocation3], 4294966912  ;;  %v1335_v3 = vmov 0.0   ;;  %v1161_v4 = vld [vmem:[%s1551_s1 + $0x28] sm:$0xff]  ;;  %v1163_v5 = vld [vmem:[%s1551_s1 + $0x38] sm:$0xff]  ;;  %vm216_vm0 = vcmask 130048  }
  0x14   : > { %287 = vmatprep.mubr.f32.mxu1 %v1335_v3  ;;  %648 = vmatprep.mubr.f32.mxu0 %v1335_v3  ;;  %v1181_v6 = vld [vmem:[%s1551_s1 + $0x88] sm:$0xff]  ;;  %v1214_v7 = vpack.c.bf16 %v1163_v5, %v1161_v4  ;;  %v1183_v8 = vld [vmem:[%s1551_s1 + $0x98] sm:$0xff]  ;;  %v1160_v9 = vld [vmem:[%s1551_s1 + $0x20] sm:$0xff] }
  0x15   : > { %v1162_v10 = vld [vmem:[%s1551_s1 + $0x30] sm:$0xff]  ;;  %v1402_v11 = vpack.c.bf16 %v1183_v8, %v1181_v6  ;;  %v1180_v13 = vld [vmem:[%s1551_s1 + $0x80] sm:$0xff]  ;;  %v206_v17 = vld [vmem:[%s1551_s1 + $0x8] sm:$0xff] }
  0x16   : > { %v1216_v12 = vpack.c.bf16 %v1162_v10, %v1160_v9  ;;  %v1182_v14 = vld [vmem:[%s1551_s1 + $0x90] sm:$0xff]  ;;  %v209_v15 = vld [vmem:[#allocation2 + $0x1] sm:$0xff]  ;;  %1215 = vmatprep.subr.bf16.mxu1 %v1214_v7  ;;  %v208_v18 = vld [vmem:[%s1551_s1 + $0x18] sm:$0xff] }
  0x17   : > { %v1410_v16 = vpack.c.bf16 %v1182_v14, %v1180_v13  ;;  %v571_v19 = vld [vmem:[#allocation2 + $0x4] sm:$0xff]  ;;  %1231 = vmatprep.subr.bf16.mxu0 %v1402_v11  ;;  %v1218_v20 = vpack.c.bf16 %v208_v18, %v206_v17  ;;  %v1189_v22 = vld [vmem:[%s1551_s1 + $0xb8] sm:$0xff]  ;;  %v207_v25 = vld [vmem:[%s1551_s1 + $0x10] sm:$0xff] }
  0x18   : > { %1217 = vmatpush1.bf16.msra.mxu1 %v1216_v12  ;;  %v1187_v21 = vld [vmem:[%s1551_s1 + $0xa8] sm:$0xff]  ;;  %v205_v23 = vld [vmem:[%s1551_s1] sm:$0xff]  ;;  %v1188_v27 = vld [vmem:[%s1551_s1 + $0xb0] sm:$0xff]  ;;  %v1043_v12 = vlaneseq }
  0x19   : > { %1233 = vmatpush1.bf16.msra.mxu0 %v1410_v16  ;;  %v1234_v24 = vpack.c.bf16 %v1189_v22, %v1187_v21  ;;  %v1186_v26 = vld [vmem:[%s1551_s1 + $0xa0] sm:$0xff]  ;;  %1219 = vmatprep.subr.bf16.mxu1 %v1218_v20  ;;  %v1220_v28 = vpack.c.bf16 %v207_v25, %v205_v23  ;;  %v1169_v30 = vld [vmem:[%s1551_s1 + $0x48] sm:$0xff]  ;;  %v1171_v31 = vld [vmem:[%s1551_s1 + $0x58] sm:$0xff] }
  0x1a   : > { %v1236_v29 = vpack.c.bf16 %v1188_v27, %v1186_v26  ;;  %v1193_v32 = vld [vmem:[%s1551_s1 + $0xc8] sm:$0xff]  ;;  %v1222_v34 = vpack.c.bf16 %v1171_v31, %v1169_v30  ;;  %v1195_v35 = vld [vmem:[%s1551_s1 + $0xd8] sm:$0xff]  ;;  %v1168_v37 = vld [vmem:[%s1551_s1 + $0x40] sm:$0xff]  ;;  %v1044_v14 = vshrl.u32 %v1043_v12, 7 }
  0x1b   : > { %1164 = vmatmul.mubr.msk.f32.vlgmr.msra.gmra.mrb[0].mxu1 %vm216_vm0, %v209_v15  ;;  %1235 = vmatprep.subr.bf16.mxu0 %v1234_v24  ;;  %v210_v33 = vld [vmem:[#allocation2 + $0x9] sm:$0xff]  ;;  %v1238_v36 = vpack.c.bf16 %v1195_v35, %v1193_v32  ;;  %v1192_v39 = vld [vmem:[%s1551_s1 + $0xc0] sm:$0xff]  ;;  %v1177_v42 = vld [vmem:[%s1551_s1 + $0x78] sm:$0xff] }
  0x1c   : > { %1184 = vmatmul.mubr.msk.f32.vlgmr.msra.gmra.mrb[0].mxu0 %vm216_vm0, %v571_v19  ;;  %1221 = vmatpush1.bf16.msra.mxu1 %v1220_v28  ;;  %v1170_v38 = vld [vmem:[%s1551_s1 + $0x50] sm:$0xff]  ;;  %v1175_v41 = vld [vmem:[%s1551_s1 + $0x68] sm:$0xff]  ;;  %v203_v43 = vld [vmem:[#allocation2] sm:$0xff]  ;;  %v1049_v18 = vsub.s32 1, %v1044_v14 }
  0x1d   : > { %1237 = vmatpush1.bf16.msra.mxu0 %v1236_v29  ;;  %293 = vmatprep.mubr.f32.mxu1 %v1335_v3  ;;  %v1194_v40 = vld [vmem:[%s1551_s1 + $0xd0] sm:$0xff]  ;;  %v1224_v44 = vpack.c.bf16 %v1170_v38, %v1168_v37  ;;  %v1199_v45 = vld [vmem:[%s1551_s1 + $0xe8] sm:$0xff]  ;;  %v1201_v46 = vld [vmem:[%s1551_s1 + $0xf8] sm:$0xff]  ;;  %v1226_v49 = vpack.c.bf16 %v1177_v42, %v1175_v41 }
  0x1e   : > { %742 = vmatprep.mubr.f32.mxu0 %v1335_v3  ;;  %1223 = vmatprep.subr.bf16.mxu1 %v1222_v34  ;;  %v665_v47 = vld [vmem:[#allocation2 + $0x5] sm:$0xff]  ;;  %v1240_v48 = vpack.c.bf16 %v1194_v40, %v1192_v39  ;;  %v1242_v50 = vpack.c.bf16 %v1201_v46, %v1199_v45  ;;  %v666_v52 = vld [vmem:[#allocation2 + $0xd] sm:$0xff]  ;;  %v1207_v60 = vld [vmem:[%s1551_s1 + $0x118] sm:$0xff] }
  0x1f   : > { %1165 = vmatmul.mubr.msk.f32.gmra.mrb[2].mxu1 %vm216_vm0, %v210_v33  ;;  %1239 = vmatprep.subr.bf16.mxu0 %v1238_v36  ;;  %v204_v51 = vld [vmem:[#allocation2 + $0x8] sm:$0xff]  ;;  %v1174_v53 = vld [vmem:[%s1551_s1 + $0x60] sm:$0xff]  ;;  %v1176_v54 = vld [vmem:[%s1551_s1 + $0x70] sm:$0xff] }
  0x20   : > { %370 = vmatprep.mubr.f32.mxu1 %v1335_v3  ;;  %v1198_v55 = vld [vmem:[%s1551_s1 + $0xe0] sm:$0xff]  ;;  %v1200_v56 = vld [vmem:[%s1551_s1 + $0xf0] sm:$0xff]  ;;  %v1228_v58 = vpack.c.bf16 %v1176_v54, %v1174_v53  ;;  %v1205_v59 = vld [vmem:[%s1551_s1 + $0x108] sm:$0xff] }
  0x21   : > { %v383_v57 = vld [vmem:[#allocation2 + $0x2] sm:$0xff]  ;;  %v1244_v62 = vpack.c.bf16 %v1200_v56, %v1198_v55  ;;  %v1246_v63 = vpack.c.bf16 %v1207_v60, %v1205_v59  ;;  %v384_v0 = vld [vmem:[#allocation2 + $0xa] sm:$0xff]  ;;  %v1041_v17 = vld [vmem:[%s1552_s2] sm:$0x3] }
  0x22   : > { %v759_v61 = vld [vmem:[#allocation2 + $0x6] sm:$0xff]  ;;  %v760_v1 = vld [vmem:[#allocation2 + $0xe] sm:$0xff] }
  0x23   : > { %1166 = vmatmul.mubr.msk.f32.vlgmr.msra.gmra.mrb[0].mxu1 %vm216_vm0, %v203_v43  ;;  %v1204_v2 = vld [vmem:[%s1551_s1 + $0x100] sm:$0xff]  ;;  %v1206_v4 = vld [vmem:[%s1551_s1 + $0x110] sm:$0xff] }
  0x24   : > { %1190 = vmatmul.mubr.msk.f32.vlgmr.msra.gmra.mrb[0].mxu0 %vm216_vm0, %v665_v47  ;;  %1225 = vmatpush1.bf16.msra.mxu1 %v1224_v44  ;;  %v477_v5 = vld [vmem:[#allocation2 + $0x3] sm:$0xff]  ;;  %v1248_v7 = vpack.c.bf16 %v1206_v4, %v1204_v2  ;;  %v478_v8 = vld [vmem:[#allocation2 + $0xb] sm:$0xff] }
  0x25   : > { %1241 = vmatpush1.bf16.msra.mxu0 %v1240_v48  ;;  %376 = vmatprep.mubr.f32.mxu1 %v1335_v3  ;;  %v853_v6 = vld [vmem:[#allocation2 + $0x7] sm:$0xff]  ;;  %v854_v9 = vld [vmem:[#allocation2 + $0xf] sm:$0xff] }
  0x26   : > { %748 = vmatprep.mubr.f32.mxu0 %v1335_v3  ;;  %1227 = vmatprep.subr.bf16.mxu1 %v1226_v49  ;;  %v572_v10 = vld [vmem:[#allocation2 + $0xc] sm:$0xff] }
  0x27   : > { %1167 = vmatmul.mubr.msk.f32.gmra.mrb[2].mxu1 %vm216_vm0, %v204_v51  ;;  %1243 = vmatprep.subr.bf16.mxu0 %v1242_v50 }
  0x28   : > { %1191 = vmatmul.mubr.msk.f32.gmra.mrb[2].mxu0 %vm216_vm0, %v666_v52  ;;  %460 = vmatprep.mubr.f32.mxu1 %v1335_v3 }
  0x29   : > { %836 = vmatprep.mubr.f32.mxu0 %v1335_v3 }
  0x2b   : > { %1172 = vmatmul.mubr.msk.f32.vlgmr.msra.gmra.mrb[0].mxu1 %vm216_vm0, %v383_v57 }
  0x2c   : > { %1196 = vmatmul.mubr.msk.f32.vlgmr.msra.gmra.mrb[0].mxu0 %vm216_vm0, %v759_v61  ;;  %1229 = vmatpush1.bf16.msra.mxu1 %v1228_v58 }
  0x2d   : > { %1245 = vmatpush1.bf16.msra.mxu0 %v1244_v62  ;;  %466 = vmatprep.mubr.f32.mxu1 %v1335_v3 }
  0x2e   : > { %842 = vmatprep.mubr.f32.mxu0 %v1335_v3  ;;  %1250 = vmatprep.subr.bf16.mxu1 %v1402_v11  ;;  %v948_v11 = vld [vmem:[#allocation2 + $0x10] sm:$0xff] }
  0x2f   : > { %1173 = vmatmul.mubr.msk.f32.gmra.mrb[2].mxu1 %vm216_vm0, %v384_v0  ;;  %1247 = vmatprep.subr.bf16.mxu0 %v1246_v63 }
  0x30   : > { %1197 = vmatmul.mubr.msk.f32.gmra.mrb[2].mxu0 %vm216_vm0, %v760_v1  ;;  %554 = vmatprep.mubr.f32.mxu1 %v1335_v3 }
  0x31   : > { %930 = vmatprep.mubr.f32.mxu0 %v1335_v3 }
  0x33   : > { %1178 = vmatmul.mubr.msk.f32.vlgmr.msra.gmra.mrb[0].mxu1 %vm216_vm0, %v477_v5 }
  0x34   : > { %1202 = vmatmul.mubr.msk.f32.vlgmr.msra.gmra.mrb[0].mxu0 %vm216_vm0, %v853_v6  ;;  %1251 = vmatpush1.bf16.msra.mxu1 %v1410_v16  ;;  %v1045_v16 = vsub.s32 0, %v1044_v14 }
  0x35   : > { %1249 = vmatpush1.bf16.msra.mxu0 %v1248_v7  ;;  %560 = vmatprep.mubr.f32.mxu1 %v1335_v3 }
  0x36   : > { %936 = vmatprep.mubr.f32.mxu0 %v1335_v3  ;;  %v1046_v19 = vrot.slane %v1041_v17, %v1045_v16 }
  0x37   : > { %1179 = vmatmul.mubr.msk.f32.gmra.mrb[2].mxu1 %vm216_vm0, %v478_v8 }
  0x38   : > { %1203 = vmatmul.mubr.msk.f32.gmra.mrb[2].mxu0 %vm216_vm0, %v854_v9  ;;  %654 = vmatprep.mubr.f32.mxu1 %v1335_v3 }
  0x39   : > { %1024 = vmatprep.mubr.f32.mxu0 %v1335_v3 }
  0x3c   : > { %1208 = vmatmul.mubr.msk.f32.vlgmr.msra.gmra.mrb[0].mxu0 %vm216_vm0, %v204_v51 }
  0x3d   : > { %1030 = vmatprep.mubr.f32.mxu0 %v1335_v3  ;;  %v1050_v3 = vrot.slane %v1041_v17, %v1049_v18 }
  0x3f   : > { %1185 = vmatmul.mubr.msk.f32.vlgmr.msra.gmra.mrb[2].mxu1 %vm216_vm0, %v572_v10 }
  0x40   : > { %1209 = vmatmul.mubr.msk.f32.gmra.mrb[2].mxu0 %vm216_vm0, %v948_v11 }
 0x106   : > { %v556_v13 = vpop.f32.mrb[0].mxu1 }
 0x107   : > { %v558_v15 = vpop.f32.mrb[1].mxu1 }
 0x10f   : > { %v1026_v20 = vpop.f32.mrb[0].mxu0 }
 0x110   : > { %v1252_v21 = vadd.f32 %v1026_v20, %v556_v13  ;;  %v1028_v22 = vpop.f32.mrb[1].mxu0 }
 0x111   : > { %v1253_v23 = vadd.f32 %v1028_v22, %v558_v15 }
 0x112   : > { %v1053_v24 = vadd.f32 %v1252_v21, %v1046_v19  ;;  %v656_v25 = vpop.f32.mrb[2].mxu1 }
 0x113   : > { %v1054_v26 = vadd.f32 %v1253_v23, %v1050_v3  ;;  %v1032_v27 = vpop.f32.mrb[2].mxu0  ;;  %v658_v28 = vpop.f32.mrb[3].mxu1 }
 0x114   : > { %1057 = vst [vmem:[%s1380_s23] sm:$0xff] %v1053_v24  ;;  %v1254_v29 = vadd.f32 %v1032_v27, %v656_v25  ;;  %v1034_v30 = vpop.f32.mrb[3].mxu0 }
 0x115   : > { %1058 = vst [vmem:[%s1380_s23 + $0x8] sm:$0xff] %v1054_v26  ;;  %v1255_v31 = vadd.f32 %v1034_v30, %v658_v28 }
 0x116   : > { %v1055_v32 = vadd.f32 %v1254_v29, %v1046_v19 }
 0x117   : > { %v1056_v33 = vadd.f32 %v1255_v31, %v1050_v3 }
 0x118   : > { %1059 = vst [vmem:[%s1380_s23 + $0x10] sm:$0xff] %v1055_v32 }
 0x119   : > { %1060 = vst [vmem:[%s1380_s23 + $0x18] sm:$0xff] %v1056_v33 }
 0x11a PF: > { %s13_s14 = sadd.s32 1, %s1333_s14   ;;  %s1554_s12 = smov %s1329_s13 }
 0x11b   : > { %p10_p5 = scmp.ge.s32.totalorder %s13_s14, 4   ;;  %s1555_s13 = smov %s1557_s15 }
 0x11d   :  { %12 = sbr.rel (!%p10_p5) target bundleno = 2 (0x2), region = 106 }
 0x124   :  { %1093 = vsyncmov [#allocation3] }
 0x127   :  { %s1094_s29 = vpop.sfrf %1093 }
 0x128   :  { %p1212_p6 = scmp.ne.s32.totalorder %s1094_s29, 0 }
 0x12a   :  { %1098 = shalt.err (%p1212_p6)  }

</bundles_post_ra>
